<compile_context>
chip_gen: v5e
topology: v5e:2x2
jax: 0.10.0
libtpu: 0.0.40
codegen_flags: <defaults>
</compile_context>

<pallas_src>
import jax
import jax.numpy as jnp
from jax.experimental import pallas as pl
from jax.experimental.pallas import tpu as pltpu

MAX_LENGTH = 10
LANE = 128          # TPU lane width; every packed segment is padded to this
NEG_INF = -1e30     # bias padding for softmax / log-softmax lanes


# ----------------------------------------------------------------------------- kernel
def _attn_decoder_step_kernel(
    tok_ref,    # SMEM (T,) int32 — scalar prefetch, consumed only by index_maps
    emb_ref,    # VMEM (1, 1, 128) — this step's embedding row (lane-padded)
    w1_ref,     # VMEM (256, 640)  — rows [0:128)=emb weights, [128:256)=h weights
                #                    cols: [attn | attn_combine(emb) | whh_r|z|n]
    wr_ref,     # VMEM (128, 640)  — cols: [wc_attn | wih_r | wih_z | wih_n | wo]
    b_ref,      # VMEM (1, 1152)   — [ba | bc | bhh_r|z|n | bih_r|z|n | bo]
    enc_ref,    # VMEM (128, 128)  — encoder outputs, zero-padded
    h0_ref,     # VMEM (1, 128)    — initial hidden (lane-padded)
    out_ref,    # VMEM (1, 1, 384) — [logp | h_new | attn_w], each 128 lanes
    h_scr,      # VMEM (1, 128) scratch — hidden state carried across grid steps
):
    del tok_ref
    t = pl.program_id(0)

    @pl.when(t == 0)
    def _():
        h_scr[...] = h0_ref[...]

    emb = emb_ref[0]          # (1, 128)  (dropout == identity in eval mode)
    h = h_scr[...]            # (1, 128)

    # One fused projection for everything that depends only on (emb, h):
    # d1 = [attn_logits(128) | x_emb(128) | gh_r(128) | gh_z(128) | gh_n(128)]
    d1 = (jnp.dot(emb, w1_ref[0:LANE, :], preferred_element_type=jnp.float32)
          + jnp.dot(h, w1_ref[LANE:2 * LANE, :], preferred_element_type=jnp.float32)
          + b_ref[:, 0:5 * LANE])

    # attention softmax over max_length (padded lanes hold -1e30 -> exactly 0 weight)
    logits_a = d1[:, 0:LANE]
    m = jnp.max(logits_a, axis=-1, keepdims=True)
    e = jnp.exp(logits_a - m)
    attn_w = e / jnp.sum(e, axis=-1, keepdims=True)                     # (1, 128)

    # attn_applied = attn_weights @ encoder_outputs
    attn_applied = jnp.dot(attn_w, enc_ref[...],
                           preferred_element_type=jnp.float32)          # (1, 128)

    # attn_combine(cat([emb, attn_applied]))  (dead F.relu of the reference omitted)
    x = d1[:, LANE:2 * LANE] + jnp.dot(attn_applied, wr_ref[:, 0:LANE],
                                       preferred_element_type=jnp.float32)

    # GRU (PyTorch gate order r|z|n), every gate at a 128-lane boundary.
    gh = d1[:, 2 * LANE:5 * LANE]
    gi = (jnp.dot(x, wr_ref[:, LANE:4 * LANE], preferred_element_type=jnp.float32)
          + b_ref[:, 5 * LANE:8 * LANE])
    r = jax.nn.sigmoid(gi[:, 0:LANE] + gh[:, 0:LANE])
    z = jax.nn.sigmoid(gi[:, LANE:2 * LANE] + gh[:, LANE:2 * LANE])
    n = jnp.tanh(gi[:, 2 * LANE:3 * LANE] + r * gh[:, 2 * LANE:3 * LANE])
    h_new = (1.0 - z) * n + z * h                                        # (1, 128)
    h_scr[...] = h_new

    # output = log_softmax(out(h_new))  (padded vocab lanes hold -1e30)
    logits = (jnp.dot(h_new, wr_ref[:, 4 * LANE:5 * LANE],
                      preferred_element_type=jnp.float32)
              + b_ref[:, 8 * LANE:9 * LANE])
    m2 = jnp.max(logits, axis=-1, keepdims=True)
    sh = logits - m2
    logp = sh - jnp.log(jnp.sum(jnp.exp(sh), axis=-1, keepdims=True))

    # Lane-dense packed output slab.
    out_ref[:, :, 0:LANE] = logp.reshape(1, 1, LANE)
    out_ref[:, :, LANE:2 * LANE] = h_new.reshape(1, 1, LANE)
    out_ref[:, :, 2 * LANE:3 * LANE] = attn_w.reshape(1, 1, LANE)


# ----------------------------------------------------------------------------- packing
def pack_params(params, max_length):
    """Pack the nn.Module parameters into lane-aligned VMEM-friendly arrays (once)."""
    emb = params["emb"]
    V, H = emb.shape
    L = max_length
    assert H <= LANE and L <= LANE and V <= LANE, "demo packing assumes dims <= 128"
    f32 = jnp.float32

    def pad_cols(w, n):
        return jnp.pad(w.astype(f32), ((0, 0), (0, n - w.shape[1])))

    def pad_rows(w, n):
        return jnp.pad(w.astype(f32), ((0, n - w.shape[0]), (0, 0)))

    wa, wc = params["wa"], params["wc"]            # (2H, L), (2H, H)
    wih, whh, wo = params["wih"], params["whh"], params["wo"]
    wih_g = [wih[:, g * H:(g + 1) * H] for g in range(3)]
    whh_g = [whh[:, g * H:(g + 1) * H] for g in range(3)]

    # W1: rows [0:128) multiply the (padded) embedding, rows [128:256) the hidden.
    w1_emb = jnp.concatenate([pad_cols(wa[:H], LANE), pad_cols(wc[:H], LANE),
                              jnp.zeros((H, 3 * LANE), f32)], axis=1)
    w1_h = jnp.concatenate([pad_cols(wa[H:], LANE), jnp.zeros((H, LANE), f32)]
                           + [pad_cols(g, LANE) for g in whh_g], axis=1)
    W1 = jnp.concatenate([pad_rows(w1_emb, LANE), pad_rows(w1_h, LANE)], axis=0)  # (256, 640)

    # Wr: [wc[H:] | wih_r | wih_z | wih_n | wo], each block padded to 128 lanes.
    Wr = pad_rows(jnp.concatenate([pad_cols(wc[H:], LANE)]
                                  + [pad_cols(g, LANE) for g in wih_g]
                                  + [pad_cols(wo, LANE)], axis=1), LANE)          # (128, 640)

    def pad_vec(v, fill=0.0):
        out = jnp.full((LANE,), fill, f32)
        return out.at[:v.shape[0]].set(v.astype(f32))

    ba, bc = params["ba"].reshape(-1), params["bc"].reshape(-1)
    bih, bhh = params["bih"].reshape(-1), params["bhh"].reshape(-1)
    bo = params["bo"].reshape(-1)
    bias = jnp.concatenate(
        [pad_vec(ba, NEG_INF), pad_vec(bc)]
        + [pad_vec(bhh[g * H:(g + 1) * H]) for g in range(3)]
        + [pad_vec(bih[g * H:(g + 1) * H]) for g in range(3)]
        + [pad_vec(bo, NEG_INF)]).reshape(1, 9 * LANE)                            # (1, 1152)

    emb_tab = jnp.pad(emb.astype(f32), ((0, 0), (0, LANE - H))).reshape(V, 1, LANE)
    return dict(emb_tab=emb_tab, W1=W1, Wr=Wr, bias=bias, H=H, V=V, L=L)


# ----------------------------------------------------------------------------- wrappers
def attn_decoder_decode(packed, tokens, hidden0, encoder_outputs):
    """T teacher-forced decoder steps fused into ONE pallas_call (grid over steps).

    tokens: (T,) int32; hidden0: (1, 1, H); encoder_outputs: (1, L, H).
    Returns per-step log-probs (T, V), hidden states (T, H), attention weights (T, L).
    """
    H, V, L = packed["H"], packed["V"], packed["L"]
    T = int(tokens.shape[0])

    tok = jnp.clip(tokens.astype(jnp.int32), 0, V - 1)       # guard OOB row DMA
    h0 = jnp.zeros((1, LANE), jnp.float32).at[:, :H].set(
        hidden0.reshape(1, H).astype(jnp.float32))
    enc = jnp.zeros((LANE, LANE), jnp.float32).at[:L, :H].set(
        encoder_outputs.reshape(L, H).astype(jnp.float32))

    grid_spec = pltpu.PrefetchScalarGridSpec(
        num_scalar_prefetch=1,
        grid=(T,),
        in_specs=[
            # one embedding row per step, selected by the prefetched token id
            pl.BlockSpec((1, 1, LANE), lambda t, tok: (tok[t], 0, 0)),
            # weights / biases / encoder outputs / h0: constant block -> VMEM-resident
            pl.BlockSpec((2 * LANE, 5 * LANE), lambda t, tok: (0, 0)),
            pl.BlockSpec((LANE, 5 * LANE), lambda t, tok: (0, 0)),
            pl.BlockSpec((1, 9 * LANE), lambda t, tok: (0, 0)),
            pl.BlockSpec((LANE, LANE), lambda t, tok: (0, 0)),
            pl.BlockSpec((1, LANE), lambda t, tok: (0, 0)),
        ],
        out_specs=pl.BlockSpec((1, 1, 3 * LANE), lambda t, tok: (t, 0, 0)),
        scratch_shapes=[pltpu.VMEM((1, LANE), jnp.float32)],
    )

    out = pl.pallas_call(
        _attn_decoder_step_kernel,
        out_shape=jax.ShapeDtypeStruct((T, 1, 3 * LANE), jnp.float32),
        grid_spec=grid_spec,
        compiler_params=pltpu.CompilerParams(dimension_semantics=("arbitrary",)),
    )(tok, packed["emb_tab"], packed["W1"], packed["Wr"], packed["bias"], enc, h0)

    out = out[:, 0, :]                                        # (T, 384)
    return (out[:, 0:V], out[:, LANE:LANE + H], out[:, 2 * LANE:2 * LANE + L])


def attn_decoder_forward(packed, input_t, hidden_t, encoder_outputs):
    """Single decoder step, matching the PyTorch module forward.
    input_t: (1, 1) int; hidden_t: (1, 1, H); encoder_outputs: (1, L, H)."""
    H, V, L = packed["H"], packed["V"], packed["L"]
    tokens = input_t.reshape(-1)[:1].astype(jnp.int32)
    logp, h, aw = attn_decoder_decode(packed, tokens, hidden_t, encoder_outputs)
    return logp.reshape(1, 1, V), h.reshape(1, 1, H), aw.reshape(1, 1, L)


# ----------------------------------------------------------------------------- params / reference
def init_params(key, vocab_size, hidden_size, max_length):
    H, V, L = hidden_size, vocab_size, max_length
    ks = jax.random.split(key, 11)

    def unif(k, shape, fan_in):
        b = 1.0 / jnp.sqrt(jnp.float32(fan_in))
        return jax.random.uniform(k, shape, jnp.float32, -b, b)

    return dict(
        emb=jax.random.normal(ks[0], (V, H), jnp.float32),
        wa=unif(ks[1], (2 * H, L), 2 * H), ba=unif(ks[2], (1, L), 2 * H),
        wc=unif(ks[3], (2 * H, H), 2 * H), bc=unif(ks[4], (1, H), 2 * H),
        wih=unif(ks[5], (H, 3 * H), H), bih=unif(ks[6], (1, 3 * H), H),
        whh=unif(ks[7], (H, 3 * H), H), bhh=unif(ks[8], (1, 3 * H), H),
        wo=unif(ks[9], (H, V), H), bo=unif(ks[10], (1, V), H),
    )


def reference_forward(params, input_t, hidden_t, encoder_outputs):
    """Pure-JAX mirror of the PyTorch forward (eval mode) for validation."""
    H = hidden_t.shape[-1]
    emb = params["emb"][input_t]                          # (1,1,H)
    hid = jnp.transpose(hidden_t, (1, 0, 2))              # (1,1,H)
    cat1 = jnp.concatenate([emb, hid], axis=2)            # (1,1,2H)
    attn_w = jax.nn.softmax(cat1 @ params["wa"] + params["ba"], axis=2)
    attn_applied = jnp.matmul(attn_w, encoder_outputs)    # (1,1,H)
    cat2 = jnp.concatenate([emb, attn_applied], axis=2)   # (1,1,2H)
    x = cat2 @ params["wc"] + params["bc"]                # (1,1,H)
    gi = x @ params["wih"] + params["bih"]
    gh = hid @ params["whh"] + params["bhh"]
    r = jax.nn.sigmoid(gi[..., :H] + gh[..., :H])
    z = jax.nn.sigmoid(gi[..., H:2 * H] + gh[..., H:2 * H])
    n = jnp.tanh(gi[..., 2 * H:] + r * gh[..., 2 * H:])
    h_new = (1.0 - z) * n + z * hid
    logp = jax.nn.log_softmax(h_new @ params["wo"] + params["bo"], axis=2)
    return logp, jnp.transpose(h_new, (1, 0, 2)), attn_w


# ----------------------------------------------------------------------------- demo
if __name__ == "__main__":
    VOCAB, HIDDEN, L = 64, 32, MAX_LENGTH
    T = 4

    key = jax.random.PRNGKey(0)
    kp, kh, ke, kt = jax.random.split(key, 4)
    params = init_params(kp, VOCAB, HIDDEN, L)
    packed = pack_params(params, L)

    hidden_t = jax.random.normal(kh, (1, 1, HIDDEN), jnp.float32)         # (1, N, H)
    encoder_outputs = jax.random.normal(ke, (1, L, HIDDEN), jnp.float32)  # (N, L, H)

    # --- single step (exactly the module's forward) ---
    input_t = jnp.array([[3]], dtype=jnp.int32)                            # (N=1, seq=1)
    logp, h_new, attn_w = jax.block_until_ready(
        attn_decoder_forward(packed, input_t, hidden_t, encoder_outputs))
    logp_r, h_r, attn_r = reference_forward(params, input_t, hidden_t, encoder_outputs)

    assert logp.shape == (1, 1, VOCAB) and h_new.shape == (1, 1, HIDDEN) and attn_w.shape == (1, 1, L)
    assert jnp.allclose(logp, logp_r, atol=1e-4), "log_softmax output mismatch"
    assert jnp.allclose(h_new, h_r, atol=1e-4), "hidden state mismatch"
    assert jnp.allclose(attn_w, attn_r, atol=1e-4), "attention weights mismatch"

    # --- fused T-step teacher-forced decode: one pallas_call, grid over timesteps ---
    tokens = jax.random.randint(kt, (T,), 0, VOCAB, dtype=jnp.int32)
    logp_all, h_all, attn_all = jax.block_until_ready(
        attn_decoder_decode(packed, tokens, hidden_t, encoder_outputs))

    h_ref = hidden_t
    for step in range(T):
        lp_r, h_ref, aw_r = reference_forward(
            params, tokens[step].reshape(1, 1), h_ref, encoder_outputs)
        assert jnp.allclose(logp_all[step], lp_r[0, 0], atol=1e-4), f"step {step}: logp mismatch"
        assert jnp.allclose(h_all[step], h_ref[0, 0], atol=1e-4), f"step {step}: hidden mismatch"
        assert jnp.allclose(attn_all[step], aw_r[0, 0], atol=1e-4), f"step {step}: attn mismatch"

    print("KERNEL_OK")
</pallas_src>

<mosaic_0001>
module attributes {stable_mosaic.version = 11 : i64} {
  func.func @_attn_decoder_step_kernel(%arg0: i32, %arg1: memref<1xi32, #tpu.memory_space<smem>>, %arg2: memref<1x1x128xf32, #tpu.memory_space<vmem>>, %arg3: memref<256x640xf32, #tpu.memory_space<vmem>>, %arg4: memref<128x640xf32, #tpu.memory_space<vmem>>, %arg5: memref<1x1152xf32, #tpu.memory_space<vmem>>, %arg6: memref<128x128xf32, #tpu.memory_space<vmem>>, %arg7: memref<1x128xf32, #tpu.memory_space<vmem>>, %arg8: memref<1x1x384xf32, #tpu.memory_space<vmem>>, %arg9: memref<1x128xf32, #tpu.memory_space<vmem>>) attributes {dimension_semantics = [#tpu.dimension_semantics<arbitrary>], iteration_bounds = array<i64: 1>, scalar_prefetch = 1 : i64, scratch_operands = 1 : i64, tpu.core_type = #tpu.core_type<tc>, window_params = [{transform_indices = @transform_0, window_bounds = array<i64: 1, 1, 128>}, {pipeline_mode = #tpu.pipeline_mode<synchronous>, transform_indices = @transform_1, window_bounds = array<i64: 256, 640>}, {pipeline_mode = #tpu.pipeline_mode<synchronous>, transform_indices = @transform_2, window_bounds = array<i64: 128, 640>}, {pipeline_mode = #tpu.pipeline_mode<synchronous>, transform_indices = @transform_3, window_bounds = array<i64: 1, 1152>}, {pipeline_mode = #tpu.pipeline_mode<synchronous>, transform_indices = @transform_4, window_bounds = array<i64: 128, 128>}, {pipeline_mode = #tpu.pipeline_mode<synchronous>, transform_indices = @transform_5, window_bounds = array<i64: 1, 128>}, {transform_indices = @transform_6, window_bounds = array<i64: 1, 1, 384>}]} {
    %c0_i32 = arith.constant 0 : i32
    %0 = arith.cmpi eq, %arg0, %c0_i32 : i32
    %1 = arith.extui %0 : i1 to i32
    %c0_i32_0 = arith.constant 0 : i32
    %2 = arith.cmpi ne, %1, %c0_i32_0 : i32
    scf.if %2 {
      %c0_41 = arith.constant 0 : index
      %c0_42 = arith.constant 0 : index
      %81 = vector.load %arg7[%c0_41, %c0_42] : memref<1x128xf32, #tpu.memory_space<vmem>>, vector<1x128xf32>
      %c0_43 = arith.constant 0 : index
      %c0_44 = arith.constant 0 : index
      %82 = vector.load %arg9[%c0_43, %c0_44] : memref<1x128xf32, #tpu.memory_space<vmem>>, vector<1x128xf32>
      tpu.vector_store %arg9[%c0_43, %c0_44], %81 {strides = array<i32>} : memref<1x128xf32, #tpu.memory_space<vmem>>, vector<1x128xf32>,
    } else {
    }
    %c0 = arith.constant 0 : index
    %c0_1 = arith.constant 0 : index
    %c0_2 = arith.constant 0 : index
    %3 = vector.load %arg2[%c0, %c0_1, %c0_2] : memref<1x1x128xf32, #tpu.memory_space<vmem>>, vector<1x1x128xf32>
    %4 = vector.shape_cast %3 : vector<1x1x128xf32> to vector<1x128xf32>
    %c0_3 = arith.constant 0 : index
    %c0_4 = arith.constant 0 : index
    %5 = vector.load %arg9[%c0_3, %c0_4] : memref<1x128xf32, #tpu.memory_space<vmem>>, vector<1x128xf32>
    %c0_5 = arith.constant 0 : index
    %c0_6 = arith.constant 0 : index
    %6 = vector.load %arg3[%c0_5, %c0_6] : memref<256x640xf32, #tpu.memory_space<vmem>>, vector<128x640xf32>
    %cst = arith.constant dense<0.000000e+00> : vector<1x640xf32>
    %7 = tpu.matmul %4, %6, %cst {dimension_numbers = #tpu.dot_dimension_numbers<[1], [0], [0], [1], [0, 0, 1, 1], [], []>} : vector<1x128xf32>, vector<128x640xf32>, vector<1x640xf32> -> vector<1x640xf32>
    %c128 = arith.constant 128 : index
    %c0_7 = arith.constant 0 : index
    %8 = vector.load %arg3[%c128, %c0_7] : memref<256x640xf32, #tpu.memory_space<vmem>>, vector<128x640xf32>
    %cst_8 = arith.constant dense<0.000000e+00> : vector<1x640xf32>
    %9 = tpu.matmul %5, %8, %cst_8 {dimension_numbers = #tpu.dot_dimension_numbers<[1], [0], [0], [1], [0, 0, 1, 1], [], []>} : vector<1x128xf32>, vector<128x640xf32>, vector<1x640xf32> -> vector<1x640xf32>
    %10 = arith.addf %7, %9 : vector<1x640xf32>
    %c0_9 = arith.constant 0 : index
    %c0_10 = arith.constant 0 : index
    %11 = vector.load %arg5[%c0_9, %c0_10] : memref<1x1152xf32, #tpu.memory_space<vmem>>, vector<1x640xf32>
    %12 = arith.addf %10, %11 : vector<1x640xf32>
    %13 = vector.extract_strided_slice %12 {offsets = [0, 0], sizes = [1, 128], strides = [1, 1]} : vector<1x640xf32> to vector<1x128xf32>
    %cst_11 = arith.constant dense<0xFF800000> : vector<1xf32>
    %14 = vector.multi_reduction <maximumf>, %13, %cst_11 [1] : vector<1x128xf32> to vector<1xf32>
    %15 = vector.shape_cast %14 : vector<1xf32> to vector<1x1xf32>
    %16 = vector.broadcast %15 : vector<1x1xf32> to vector<1x128xf32>
    %17 = arith.subf %13, %16 : vector<1x128xf32>
    %18 = math.exp %17 : vector<1x128xf32>
    %cst_12 = arith.constant dense<0.000000e+00> : vector<1xf32>
    %19 = vector.multi_reduction <add>, %18, %cst_12 [1] : vector<1x128xf32> to vector<1xf32>
    %20 = vector.shape_cast %19 : vector<1xf32> to vector<1x1xf32>
    %21 = vector.broadcast %20 : vector<1x1xf32> to vector<1x128xf32>
    %22 = arith.divf %18, %21 : vector<1x128xf32>
    %c0_13 = arith.constant 0 : index
    %c0_14 = arith.constant 0 : index
    %23 = vector.load %arg6[%c0_13, %c0_14] : memref<128x128xf32, #tpu.memory_space<vmem>>, vector<128x128xf32>
    %cst_15 = arith.constant dense<0.000000e+00> : vector<1x128xf32>
    %24 = tpu.matmul %22, %23, %cst_15 {dimension_numbers = #tpu.dot_dimension_numbers<[1], [0], [0], [1], [0, 0, 1, 1], [], []>} : vector<1x128xf32>, vector<128x128xf32>, vector<1x128xf32> -> vector<1x128xf32>
    %25 = vector.extract_strided_slice %12 {offsets = [0, 128], sizes = [1, 128], strides = [1, 1]} : vector<1x640xf32> to vector<1x128xf32>
    %c0_16 = arith.constant 0 : index
    %c0_17 = arith.constant 0 : index
    %26 = vector.load %arg4[%c0_16, %c0_17] : memref<128x640xf32, #tpu.memory_space<vmem>>, vector<128x128xf32>
    %cst_18 = arith.constant dense<0.000000e+00> : vector<1x128xf32>
    %27 = tpu.matmul %24, %26, %cst_18 {dimension_numbers = #tpu.dot_dimension_numbers<[1], [0], [0], [1], [0, 0, 1, 1], [], []>} : vector<1x128xf32>, vector<128x128xf32>, vector<1x128xf32> -> vector<1x128xf32>
    %28 = arith.addf %25, %27 : vector<1x128xf32>
    %29 = vector.extract_strided_slice %12 {offsets = [0, 256], sizes = [1, 384], strides = [1, 1]} : vector<1x640xf32> to vector<1x384xf32>
    %c0_19 = arith.constant 0 : index
    %c128_20 = arith.constant 128 : index
    %30 = vector.load %arg4[%c0_19, %c128_20] : memref<128x640xf32, #tpu.memory_space<vmem>>, vector<128x384xf32>
    %cst_21 = arith.constant dense<0.000000e+00> : vector<1x384xf32>
    %31 = tpu.matmul %28, %30, %cst_21 {dimension_numbers = #tpu.dot_dimension_numbers<[1], [0], [0], [1], [0, 0, 1, 1], [], []>} : vector<1x128xf32>, vector<128x384xf32>, vector<1x384xf32> -> vector<1x384xf32>
    %c0_22 = arith.constant 0 : index
    %c640 = arith.constant 640 : index
    %32 = vector.load %arg5[%c0_22, %c640] : memref<1x1152xf32, #tpu.memory_space<vmem>>, vector<1x384xf32>
    %33 = arith.addf %31, %32 : vector<1x384xf32>
    %34 = vector.extract_strided_slice %33 {offsets = [0, 0], sizes = [1, 128], strides = [1, 1]} : vector<1x384xf32> to vector<1x128xf32>
    %35 = vector.extract_strided_slice %29 {offsets = [0, 0], sizes = [1, 128], strides = [1, 1]} : vector<1x384xf32> to vector<1x128xf32>
    %36 = arith.addf %34, %35 : vector<1x128xf32>
    %37 = arith.negf %36 : vector<1x128xf32>
    %38 = math.exp %37 : vector<1x128xf32>
    %cst_23 = arith.constant 1.000000e+00 : f32
    %39 = vector.broadcast %cst_23 : f32 to vector<1x128xf32>
    %40 = arith.addf %39, %38 : vector<1x128xf32>
    %41 = arith.divf %39, %40 : vector<1x128xf32>
    %42 = vector.extract_strided_slice %33 {offsets = [0, 128], sizes = [1, 128], strides = [1, 1]} : vector<1x384xf32> to vector<1x128xf32>
    %43 = vector.extract_strided_slice %29 {offsets = [0, 128], sizes = [1, 128], strides = [1, 1]} : vector<1x384xf32> to vector<1x128xf32>
    %44 = arith.addf %42, %43 : vector<1x128xf32>
    %45 = arith.negf %44 : vector<1x128xf32>
    %46 = math.exp %45 : vector<1x128xf32>
    %cst_24 = arith.constant 1.000000e+00 : f32
    %47 = vector.broadcast %cst_24 : f32 to vector<1x128xf32>
    %48 = arith.addf %47, %46 : vector<1x128xf32>
    %49 = arith.divf %47, %48 : vector<1x128xf32>
    %50 = vector.extract_strided_slice %33 {offsets = [0, 256], sizes = [1, 128], strides = [1, 1]} : vector<1x384xf32> to vector<1x128xf32>
    %51 = vector.extract_strided_slice %29 {offsets = [0, 256], sizes = [1, 128], strides = [1, 1]} : vector<1x384xf32> to vector<1x128xf32>
    %52 = arith.mulf %41, %51 : vector<1x128xf32>
    %53 = arith.addf %50, %52 : vector<1x128xf32>
    %54 = math.tanh %53 : vector<1x128xf32>
    %cst_25 = arith.constant 1.000000e+00 : f32
    %55 = vector.broadcast %cst_25 : f32 to vector<1x128xf32>
    %56 = arith.subf %55, %49 : vector<1x128xf32>
    %57 = arith.mulf %56, %54 : vector<1x128xf32>
    %58 = arith.mulf %49, %5 : vector<1x128xf32>
    %59 = arith.addf %57, %58 : vector<1x128xf32>
    %c0_26 = arith.constant 0 : index
    %c0_27 = arith.constant 0 : index
    %60 = vector.load %arg9[%c0_26, %c0_27] : memref<1x128xf32, #tpu.memory_space<vmem>>, vector<1x128xf32>
    tpu.vector_store %arg9[%c0_26, %c0_27], %59 {strides = array<i32>} : memref<1x128xf32, #tpu.memory_space<vmem>>, vector<1x128xf32>,
    %c0_28 = arith.constant 0 : index
    %c512 = arith.constant 512 : index
    %61 = vector.load %arg4[%c0_28, %c512] : memref<128x640xf32, #tpu.memory_space<vmem>>, vector<128x128xf32>
    %cst_29 = arith.constant dense<0.000000e+00> : vector<1x128xf32>
    %62 = tpu.matmul %59, %61, %cst_29 {dimension_numbers = #tpu.dot_dimension_numbers<[1], [0], [0], [1], [0, 0, 1, 1], [], []>} : vector<1x128xf32>, vector<128x128xf32>, vector<1x128xf32> -> vector<1x128xf32>
    %c0_30 = arith.constant 0 : index
    %c1024 = arith.constant 1024 : index
    %63 = vector.load %arg5[%c0_30, %c1024] : memref<1x1152xf32, #tpu.memory_space<vmem>>, vector<1x128xf32>
    %64 = arith.addf %62, %63 : vector<1x128xf32>
    %cst_31 = arith.constant dense<0xFF800000> : vector<1xf32>
    %65 = vector.multi_reduction <maximumf>, %64, %cst_31 [1] : vector<1x128xf32> to vector<1xf32>
    %66 = vector.shape_cast %65 : vector<1xf32> to vector<1x1xf32>
    %67 = vector.broadcast %66 : vector<1x1xf32> to vector<1x128xf32>
    %68 = arith.subf %64, %67 : vector<1x128xf32>
    %69 = math.exp %68 : vector<1x128xf32>
    %cst_32 = arith.constant dense<0.000000e+00> : vector<1xf32>
    %70 = vector.multi_reduction <add>, %69, %cst_32 [1] : vector<1x128xf32> to vector<1xf32>
    %71 = vector.shape_cast %70 : vector<1xf32> to vector<1x1xf32>
    %72 = math.log %71 : vector<1x1xf32>
    %73 = vector.broadcast %72 : vector<1x1xf32> to vector<1x128xf32>
    %74 = arith.subf %68, %73 : vector<1x128xf32>
    %75 = vector.shape_cast %74 : vector<1x128xf32> to vector<1x1x128xf32>
    %c0_33 = arith.constant 0 : index
    %c0_34 = arith.constant 0 : index
    %c0_35 = arith.constant 0 : index
    %76 = vector.load %arg8[%c0_33, %c0_34, %c0_35] : memref<1x1x384xf32, #tpu.memory_space<vmem>>, vector<1x1x128xf32>
    tpu.vector_store %arg8[%c0_33, %c0_34, %c0_35], %75 {strides = array<i32>} : memref<1x1x384xf32, #tpu.memory_space<vmem>>, vector<1x1x128xf32>,
    %77 = vector.shape_cast %59 : vector<1x128xf32> to vector<1x1x128xf32>
    %c0_36 = arith.constant 0 : index
    %c0_37 = arith.constant 0 : index
    %c128_38 = arith.constant 128 : index
    %78 = vector.load %arg8[%c0_36, %c0_37, %c128_38] : memref<1x1x384xf32, #tpu.memory_space<vmem>>, vector<1x1x128xf32>
    tpu.vector_store %arg8[%c0_36, %c0_37, %c128_38], %77 {strides = array<i32>} : memref<1x1x384xf32, #tpu.memory_space<vmem>>, vector<1x1x128xf32>,
    %79 = vector.shape_cast %22 : vector<1x128xf32> to vector<1x1x128xf32>
    %c0_39 = arith.constant 0 : index
    %c0_40 = arith.constant 0 : index
    %c256 = arith.constant 256 : index
    %80 = vector.load %arg8[%c0_39, %c0_40, %c256] : memref<1x1x384xf32, #tpu.memory_space<vmem>>, vector<1x1x128xf32>
    tpu.vector_store %arg8[%c0_39, %c0_40, %c256], %79 {strides = array<i32>} : memref<1x1x384xf32, #tpu.memory_space<vmem>>, vector<1x1x128xf32>,
    return
  }
  func.func @transform_0(%arg0: i32, %arg1: memref<1xi32, #tpu.memory_space<smem>>) -> (i32, i32, i32) {
    %0 = arith.index_cast %arg0 : i32 to index
    %1 = memref.load %arg1[%0] : memref<1xi32, #tpu.memory_space<smem>>
    %c0_i32 = arith.constant 0 : i32
    %c0_i32_0 = arith.constant 0 : i32
    %c0_i32_1 = arith.constant 0 : i32
    return %1, %c0_i32, %c0_i32_0 : i32, i32, i32
  }
  func.func @transform_1(%arg0: i32, %arg1: memref<1xi32, #tpu.memory_space<smem>>) -> (i32, i32) {
    %c0_i32 = arith.constant 0 : i32
    %c0_i32_0 = arith.constant 0 : i32
    %c0_i32_1 = arith.constant 0 : i32
    return %c0_i32, %c0_i32_0 : i32, i32
  }
  func.func @transform_2(%arg0: i32, %arg1: memref<1xi32, #tpu.memory_space<smem>>) -> (i32, i32) {
    %c0_i32 = arith.constant 0 : i32
    %c0_i32_0 = arith.constant 0 : i32
    %c0_i32_1 = arith.constant 0 : i32
    return %c0_i32, %c0_i32_0 : i32, i32
  }
  func.func @transform_3(%arg0: i32, %arg1: memref<1xi32, #tpu.memory_space<smem>>) -> (i32, i32) {
    %c0_i32 = arith.constant 0 : i32
    %c0_i32_0 = arith.constant 0 : i32
    %c0_i32_1 = arith.constant 0 : i32
    return %c0_i32, %c0_i32_0 : i32, i32
  }
  func.func @transform_4(%arg0: i32, %arg1: memref<1xi32, #tpu.memory_space<smem>>) -> (i32, i32) {
    %c0_i32 = arith.constant 0 : i32
    %c0_i32_0 = arith.constant 0 : i32
    %c0_i32_1 = arith.constant 0 : i32
    return %c0_i32, %c0_i32_0 : i32, i32
  }
  func.func @transform_5(%arg0: i32, %arg1: memref<1xi32, #tpu.memory_space<smem>>) -> (i32, i32) {
    %c0_i32 = arith.constant 0 : i32
    %c0_i32_0 = arith.constant 0 : i32
    %c0_i32_1 = arith.constant 0 : i32
    return %c0_i32, %c0_i32_0 : i32, i32
  }
  func.func @transform_6(%arg0: i32, %arg1: memref<1xi32, #tpu.memory_space<smem>>) -> (i32, i32, i32) {
    %c0_i32 = arith.constant 0 : i32
    %c0_i32_0 = arith.constant 0 : i32
    %c0_i32_1 = arith.constant 0 : i32
    return %arg0, %c0_i32, %c0_i32_0 : i32, i32, i32
  }
}

</mosaic_0001>

<bundles_post_ra>
// kernel: tpu_custom_call.1
= control target key start
LH: loop header
LB: loop body
LE: loop exit
PB: predicated region body
PF: predicated region fallthrough
CT: control target
= control target key end

     0   :  { %13 = vsyncpa [#allocation6], 0  ;;  %s1151_s0 = inlined_call_operand.<no memory space> [shape: s32[1], index: 0, kind: input, shape index: {}]   ;;  %s1152_s1 = inlined_call_operand.hbm [shape: f32[64,1,128], index: 1, kind: input, shape index: {}]   ;;  %s1153_s2 = inlined_call_operand.hbm [shape: f32[256,640], index: 2, kind: input, shape index: {}]   ;;  %s1154_s3 = inlined_call_operand.hbm [shape: f32[128,640], index: 3, kind: input, shape index: {}]   ;;  %s1155_s4 = inlined_call_operand.hbm [shape: f32[1,1152], index: 4, kind: input, shape index: {}]   ;;  %s1156_s5 = inlined_call_operand.hbm [shape: f32[128,128], index: 5, kind: input, shape index: {}]   ;;  %s1157_s6 = inlined_call_operand.vmem [shape: f32[1,128], index: 6, kind: input, shape index: {}]   ;;  %s1158_s7 = inlined_call_operand.hbm [shape: f32[1,1,384], index: 7, kind: output, shape index: {}]  }
   0x1   :  { %14 = vsyncpa [#allocation9], 0 }
   0x2   :  { %15 = vsyncpa [#allocation12], 0  ;;  %s34_s26 = sshll.u32 %s1153_s2, 4  ;;  %s35_s26 = int_to_ptr.hbm [resolvable:$true] %s34_s26 }
   0x3   :  { %16 = vsyncpa [#allocation7], 0  ;;  %s1009_s27 = smov [#allocation8]   ;;  %s61_s8 = sshll.u32 %s1155_s4, 4  ;;  %s62_s8 = int_to_ptr.hbm [resolvable:$true] %s61_s8 }
   0x4   :  { %s36_s28 = sshll.u32 %s1009_s27, 4  ;;  %s1010_s9 = smov 640   ;;  %s37_s28 = int_to_ptr.vmem [resolvable:$true] %s36_s28 }
   0x5   :  { %s1011_s10 = smov 40   ;;  %s1012_s11 = smov [#allocation11]  }
   0x6   :  { %42 = dma.hbm_to_vmem [thread:$0]  %s35_s26, 20480, %s37_s28, [#allocation9], %s1010_s9, %s1010_s9, %s1011_s10  }
   0x7   :  { %s63_s12 = sshll.u32 %s1012_s11, 4  ;;  %s22_s16 = scalar_lea.hbm %s1152_s1, %s1151_s0  ;;  %s64_s12 = int_to_ptr.vmem [resolvable:$true] %s63_s12 }
   0x8   :  { %s24_s17 = sshll.u32 %s22_s16, 4  ;;  %s1013_s4 = smov [#allocation5]   ;;  %s25_s17 = int_to_ptr.hbm [resolvable:$true] %s24_s17 }
   0x9   :  { %66 = dma.hbm_to_vmem [thread:$0]  %s62_s8, 144, %s64_s12, [#allocation12]  }
   0xa   :  { %s26_s18 = sshll.u32 %s1013_s4, 4  ;;  %s47_s21 = sshll.u32 %s1154_s3, 4  ;;  %s27_s18 = int_to_ptr.vmem [resolvable:$true] %s26_s18  ;;  %s48_s21 = int_to_ptr.hbm [resolvable:$true] %s47_s21 }
   0xb   :  { %s905_s22 = sshra.s32 %s25_s17, 4  ;;  %s909_s0 = scalar_lea.hbm %s1152_s1, 64  ;;  %s906_s22 = int_to_ptr.hbm [resolvable:$true] %s905_s22 }
   0xc   :  { %s907_s23 = scalar_lea.hbm %s906_s22, 1  ;;  %p910_p1 = scmp.lt.s32.totalorder %s906_s22, %s1152_s1 }
   0xd   :  { %p908_p0 = scmp.ne.s32.totalorder %s906_s22, %s907_s23  ;;  %p911_p2 = scmp.lt.s32.totalorder %s909_s0, %s907_s23 }
   0xf   :  { %p912_p3 = por %p911_p2, %p910_p1 }
  0x11   :  { %p913_p4 = pnand %p912_p3, %p908_p0 }
  0x13   :  { %916 = shalt.err (!%p913_p4)
}
  0x14   :  { %29 = dma.hbm_to_vmem [thread:$0]  %s25_s17, 16, %s27_s18, [#allocation6]  }
  0x15   :  { %s71_s29 = sshll.u32 %s1156_s5, 4  ;;  %s1014_s30 = smov [#allocation10]   ;;  %s72_s29 = int_to_ptr.hbm [resolvable:$true] %s71_s29 }
  0x16   :  { %s49_s8 = sshll.u32 %s1014_s30, 4  ;;  %s1015_s11 = smov [#allocation13]   ;;  %s50_s8 = int_to_ptr.vmem [resolvable:$true] %s49_s8 }
  0x17   :  { %55 = dma.hbm_to_vmem [thread:$0]  %s48_s21, 10240, %s50_s8, [#allocation9], %s1010_s9, %s1010_s9, %s1011_s10  }
  0x18   :  { %s73_s12 = sshll.u32 %s1015_s11, 4  ;;  %s1016_s1 = smov 128   ;;  %s74_s12 = int_to_ptr.vmem [resolvable:$true] %s73_s12 }
  0x19   :  { %s1017_s13 = smov 8  }
  0x1a   :  { %79 = dma.hbm_to_vmem [thread:$0]  %s72_s29, 2048, %s74_s12, [#allocation12], %s1016_s1, %s1016_s1, %s1017_s13  }
  0x1b   :  { %1001 = dma.done.wait [#allocation6], 16  }
  0x1c   :  { %1002 = vsyncadd [#allocation6], 4294967280 }
  0x1d   :  { %1003 = dma.done.wait [#allocation9], 30720  }
  0x1e   :  { %1004 = vsyncadd [#allocation9], 4294936576 }
  0x1f   :  { %1005 = dma.done.wait [#allocation12], 2192  }
  0x20   :  { %1006 = vsyncadd [#allocation12], 4294965104  ;;  %v267_v0 = vld [vmem:[#allocation8 + $0x4e0] sm:$0xff]  ;;  %v268_v1 = vld [vmem:[#allocation8 + $0x4e8] sm:$0xff]  ;;  %vm488_vm0 = vcmask 1040384   ;;  %s813_s15 = sshll.u32 %s1158_s7, 4  ;;  %s814_s15 = int_to_ptr.hbm [resolvable:$true] %s813_s15 }
  0x21   :  { %v262_v2 = vld [vmem:[#allocation8 + $0x4b8] sm:$0xff]  ;;  %291 = vmatpush.msra.mxu1 %v267_v0  ;;  %311 = vmatpush.msra.mxu2 %v268_v1  ;;  %v263_v3 = vld [vmem:[#allocation8 + $0x4c0] sm:$0xff]  ;;  %v257_v4 = vld [vmem:[#allocation8 + $0x490] sm:$0xff] }
  0x22   :  { %v258_v5 = vld [vmem:[#allocation8 + $0x498] sm:$0xff]  ;;  %v252_v6 = vld [vmem:[#allocation8 + $0x468] sm:$0xff]  ;;  %v253_v7 = vld [vmem:[#allocation8 + $0x470] sm:$0xff] }
  0x23   :  { %292 = vmatpush.msra.mxu1 %v262_v2  ;;  %312 = vmatpush.msra.mxu2 %v263_v3  ;;  %v247_v8 = vld [vmem:[#allocation8 + $0x440] sm:$0xff]  ;;  %v248_v9 = vld [vmem:[#allocation8 + $0x448] sm:$0xff]  ;;  %v242_v10 = vld [vmem:[#allocation8 + $0x418] sm:$0xff] }
  0x24   :  { %v243_v11 = vld [vmem:[#allocation8 + $0x420] sm:$0xff]  ;;  %v237_v12 = vld [vmem:[#allocation8 + $0x3f0] sm:$0xff]  ;;  %v238_v13 = vld [vmem:[#allocation8 + $0x3f8] sm:$0xff] }
  0x25   :  { %293 = vmatpush.msra.mxu1 %v257_v4  ;;  %313 = vmatpush.msra.mxu2 %v258_v5  ;;  %v266_v14 = vld [vmem:[#allocation8 + $0x4d8] sm:$0xff]  ;;  %v261_v15 = vld [vmem:[#allocation8 + $0x4b0] sm:$0xff]  ;;  %v232_v16 = vld [vmem:[#allocation8 + $0x3c8] sm:$0xff] }
  0x26   :  { %v233_v17 = vld [vmem:[#allocation8 + $0x3d0] sm:$0xff]  ;;  %271 = vmatpush.msra.mxu0 %v266_v14  ;;  %v256_v18 = vld [vmem:[#allocation8 + $0x488] sm:$0xff]  ;;  %v227_v19 = vld [vmem:[#allocation8 + $0x3a0] sm:$0xff] }
  0x27   :  { %294 = vmatpush.msra.mxu1 %v252_v6  ;;  %314 = vmatpush.msra.mxu2 %v253_v7  ;;  %v228_v20 = vld [vmem:[#allocation8 + $0x3a8] sm:$0xff]  ;;  %v251_v21 = vld [vmem:[#allocation8 + $0x460] sm:$0xff]  ;;  %v222_v22 = vld [vmem:[#allocation8 + $0x378] sm:$0xff] }
  0x28   :  { %272 = vmatpush.msra.mxu0 %v261_v15  ;;  %v223_v23 = vld [vmem:[#allocation8 + $0x380] sm:$0xff]  ;;  %v246_v24 = vld [vmem:[#allocation8 + $0x438] sm:$0xff]  ;;  %v217_v25 = vld [vmem:[#allocation8 + $0x350] sm:$0xff] }
  0x29   :  { %295 = vmatpush.msra.mxu1 %v247_v8  ;;  %315 = vmatpush.msra.mxu2 %v248_v9  ;;  %v218_v26 = vld [vmem:[#allocation8 + $0x358] sm:$0xff]  ;;  %v241_v27 = vld [vmem:[#allocation8 + $0x410] sm:$0xff]  ;;  %v212_v28 = vld [vmem:[#allocation8 + $0x328] sm:$0xff] }
  0x2a   :  { %273 = vmatpush.msra.mxu0 %v256_v18  ;;  %v213_v29 = vld [vmem:[#allocation8 + $0x330] sm:$0xff]  ;;  %v236_v30 = vld [vmem:[#allocation8 + $0x3e8] sm:$0xff]  ;;  %v207_v31 = vld [vmem:[#allocation8 + $0x300] sm:$0xff] }
  0x2b   :  { %296 = vmatpush.msra.mxu1 %v242_v10  ;;  %316 = vmatpush.msra.mxu2 %v243_v11  ;;  %v208_v32 = vld [vmem:[#allocation8 + $0x308] sm:$0xff]  ;;  %v107_v33 = vld [vmem:[%s1157_s6] sm:$0x1]  ;;  %v231_v34 = vld [vmem:[#allocation8 + $0x3c0] sm:$0xff]  ;;  %s1018_s6 = smov [#allocation14]  }
  0x2c   :  { %274 = vmatpush.msra.mxu0 %v251_v21  ;;  %108 = vst [vmem:[#allocation2] sm:$0x1] %v107_v33  ;;  %v202_v35 = vld [vmem:[#allocation8 + $0x2d8] sm:$0xff]  ;;  %v203_v36 = vld [vmem:[#allocation8 + $0x2e0] sm:$0xff]  ;;  %v197_v38 = vld [vmem:[#allocation8 + $0x2b0] sm:$0xff]  ;;  %s811_s10 = sshll.u32 %s1018_s6, 4  ;;  %s812_s10 = int_to_ptr.vmem [resolvable:$true] %s811_s10 }
  0x2d   :  { %297 = vmatpush.msra.mxu1 %v237_v12  ;;  %317 = vmatpush.msra.mxu2 %v238_v13  ;;  %v226_v37 = vld [vmem:[#allocation8 + $0x398] sm:$0xff]  ;;  %v221_v40 = vld [vmem:[#allocation8 + $0x370] sm:$0xff]  ;;  %v192_v41 = vld [vmem:[#allocation8 + $0x288] sm:$0xff] }
  0x2e   :  { %275 = vmatpush.msra.mxu0 %v246_v24  ;;  %v198_v39 = vld [vmem:[#allocation8 + $0x2b8] sm:$0xff]  ;;  %v193_v42 = vld [vmem:[#allocation8 + $0x290] sm:$0xff]  ;;  %v187_v44 = vld [vmem:[#allocation8 + $0x260] sm:$0xff] }
  0x2f   :  { %298 = vmatpush.msra.mxu1 %v232_v16  ;;  %318 = vmatpush.msra.mxu2 %v233_v17  ;;  %v186_v43 = vld [vmem:[#allocation8 + $0x258] sm:$0xff]  ;;  %v216_v45 = vld [vmem:[#allocation8 + $0x348] sm:$0xff]  ;;  %v181_v47 = vld [vmem:[#allocation8 + $0x230] sm:$0xff] }
  0x30   :  { %276 = vmatpush.msra.mxu0 %v241_v27  ;;  %v182_v48 = vld [vmem:[#allocation8 + $0x238] sm:$0xff]  ;;  %v211_v49 = vld [vmem:[#allocation8 + $0x320] sm:$0xff]  ;;  %v176_v50 = vld [vmem:[#allocation8 + $0x208] sm:$0xff] }
  0x31   :  { %299 = vmatpush.msra.mxu1 %v227_v19  ;;  %319 = vmatpush.msra.mxu2 %v228_v20  ;;  %v177_v51 = vld [vmem:[#allocation8 + $0x210] sm:$0xff]  ;;  %v206_v52 = vld [vmem:[#allocation8 + $0x2f8] sm:$0xff]  ;;  %v171_v53 = vld [vmem:[#allocation8 + $0x1e0] sm:$0xff] }
  0x32   :  { %277 = vmatpush.msra.mxu0 %v236_v30  ;;  %v172_v54 = vld [vmem:[#allocation8 + $0x1e8] sm:$0xff]  ;;  %v201_v55 = vld [vmem:[#allocation8 + $0x2d0] sm:$0xff]  ;;  %v166_v56 = vld [vmem:[#allocation8 + $0x1b8] sm:$0xff] }
  0x33   :  { %300 = vmatpush.msra.mxu1 %v222_v22  ;;  %320 = vmatpush.msra.mxu2 %v223_v23  ;;  %v1092_v46 = vld [vmem:[#allocation2] sm:$0x1]  ;;  %v167_v57 = vld [vmem:[#allocation8 + $0x1c0] sm:$0xff]  ;;  %v196_v58 = vld [vmem:[#allocation8 + $0x2a8] sm:$0xff] }
  0x34   :  { %278 = vmatpush.msra.mxu0 %v231_v34  ;;  %v161_v59 = vld [vmem:[#allocation8 + $0x190] sm:$0xff]  ;;  %v162_v60 = vld [vmem:[#allocation8 + $0x198] sm:$0xff]  ;;  %v191_v61 = vld [vmem:[#allocation8 + $0x280] sm:$0xff] }
  0x35   :  { %301 = vmatpush.msra.mxu1 %v217_v25  ;;  %321 = vmatpush.msra.mxu2 %v218_v26  ;;  %v156_v62 = vld [vmem:[#allocation8 + $0x168] sm:$0xff]  ;;  %v157_v63 = vld [vmem:[#allocation8 + $0x170] sm:$0xff]  ;;  %v151_v0 = vld [vmem:[#allocation8 + $0x140] sm:$0xff] }
  0x36   :  { %279 = vmatpush.msra.mxu0 %v226_v37  ;;  %v152_v1 = vld [vmem:[#allocation8 + $0x148] sm:$0xff]  ;;  %v146_v2 = vld [vmem:[#allocation8 + $0x118] sm:$0xff]  ;;  %v147_v3 = vld [vmem:[#allocation8 + $0x120] sm:$0xff] }
  0x37   :  { %302 = vmatpush.msra.mxu1 %v212_v28  ;;  %322 = vmatpush.msra.mxu2 %v213_v29  ;;  %v141_v4 = vld [vmem:[#allocation8 + $0xf0] sm:$0xff]  ;;  %v142_v5 = vld [vmem:[#allocation8 + $0xf8] sm:$0xff]  ;;  %v136_v6 = vld [vmem:[#allocation8 + $0xc8] sm:$0xff] }
  0x38   :  { %280 = vmatpush.msra.mxu0 %v221_v40  ;;  %v137_v7 = vld [vmem:[#allocation8 + $0xd0] sm:$0xff]  ;;  %v131_v8 = vld [vmem:[#allocation8 + $0xa0] sm:$0xff]  ;;  %v132_v9 = vld [vmem:[#allocation8 + $0xa8] sm:$0xff] }
  0x39   :  { %303 = vmatpush.msra.mxu1 %v207_v31  ;;  %323 = vmatpush.msra.mxu2 %v208_v32  ;;  %v126_v10 = vld [vmem:[#allocation8 + $0x78] sm:$0xff]  ;;  %v127_v11 = vld [vmem:[#allocation8 + $0x80] sm:$0xff]  ;;  %v121_v12 = vld [vmem:[#allocation8 + $0x50] sm:$0xff] }
  0x3a   :  { %281 = vmatpush.msra.mxu0 %v216_v45  ;;  %v122_v13 = vld [vmem:[#allocation8 + $0x58] sm:$0xff]  ;;  %v116_v14 = vld [vmem:[#allocation8 + $0x28] sm:$0xff]  ;;  %v117_v15 = vld [vmem:[#allocation8 + $0x30] sm:$0xff] }
  0x3b   :  { %304 = vmatpush.msra.mxu1 %v202_v35  ;;  %324 = vmatpush.msra.mxu2 %v203_v36  ;;  %v111_v16 = vld [vmem:[#allocation8] sm:$0xff]  ;;  %v112_v17 = vld [vmem:[#allocation8 + $0x8] sm:$0xff]  ;;  %v1097_v18 = vld [vmem:[#allocation5] sm:$0x1] }
  0x3c   :  { %282 = vmatpush.msra.mxu0 %v211_v49  ;;  %v1103_v20 = vld [vmem:[#allocation11] sm:$0x1f]  ;;  %v269_v27 = vld [vmem:[#allocation8 + $0x4f0] sm:$0xff]  ;;  %v264_v28 = vld [vmem:[#allocation8 + $0x4c8] sm:$0xff] }
  0x3d   :  { %305 = vmatpush.msra.mxu1 %v197_v38  ;;  %325 = vmatpush.msra.mxu2 %v198_v39  ;;  %v473_v22 = vperm.slane %v1103_v20, 0  ;;  %v259_v29 = vld [vmem:[#allocation8 + $0x4a0] sm:$0xff]  ;;  %v254_v30 = vld [vmem:[#allocation8 + $0x478] sm:$0xff]  ;;  %v249_v31 = vld [vmem:[#allocation8 + $0x450] sm:$0xff] }
  0x3e   :  { %283 = vmatpush.msra.mxu0 %v206_v52  ;;  %331 = vmatpush.msra.mxu3 %v269_v27  ;;  %v244_v32 = vld [vmem:[#allocation8 + $0x428] sm:$0xff]  ;;  %v239_v33 = vld [vmem:[#allocation8 + $0x400] sm:$0xff]  ;;  %v234_v34 = vld [vmem:[#allocation8 + $0x3d8] sm:$0xff] }
  0x3f   :  { %306 = vmatpush.msra.mxu1 %v192_v41  ;;  %326 = vmatpush.msra.mxu2 %v193_v42  ;;  %v229_v35 = vld [vmem:[#allocation8 + $0x3b0] sm:$0xff]  ;;  %v224_v36 = vld [vmem:[#allocation8 + $0x388] sm:$0xff]  ;;  %v219_v37 = vld [vmem:[#allocation8 + $0x360] sm:$0xff] }
  0x40   :  { %307 = vmatmul.f32.vlgmr.msra.gmra.mxu1 %v1092_v46  ;;  %327 = vmatmul.f32.vlgmr.msra.gmra.mxu2 %v1092_v46  ;;  %v214_v40 = vld [vmem:[#allocation8 + $0x338] sm:$0xff]  ;;  %v209_v42 = vld [vmem:[#allocation8 + $0x310] sm:$0xff] }
  0x41   :  { %371 = vmatpush.msrb.mxu1 %v186_v43  ;;  %391 = vmatpush.msrb.mxu2 %v187_v44  ;;  %v204_v43 = vld [vmem:[#allocation8 + $0x2e8] sm:$0xff]  ;;  %v199_v44 = vld [vmem:[#allocation8 + $0x2c0] sm:$0xff]  ;;  %v194_v45 = vld [vmem:[#allocation8 + $0x298] sm:$0xff] }
  0x42   :  { %284 = vmatpush.msra.mxu0 %v201_v55  ;;  %332 = vmatpush.msra.mxu3 %v264_v28  ;;  %v527_v52 = vld [vmem:[#allocation13 + $0x70] sm:$0xff]  ;;  %v173_v55 = vld [vmem:[#allocation8 + $0x1f0] sm:$0xff] }
  0x43   :  { %372 = vmatpush.msrb.mxu1 %v181_v47  ;;  %392 = vmatpush.msrb.mxu2 %v182_v48  ;;  %v188_v47 = vld [vmem:[#allocation8 + $0x268] sm:$0xff]  ;;  %v235_v28 = vld [vmem:[#allocation8 + $0x3e0] sm:$0xff] }
  0x44   :  { %285 = vmatpush.msra.mxu0 %v196_v58  ;;  %333 = vmatpush.msra.mxu3 %v259_v29  ;;  %v524_v58 = vld [vmem:[#allocation13 + $0x58] sm:$0xff]  ;;  %v230_v29 = vld [vmem:[#allocation8 + $0x3b8] sm:$0xff] }
  0x45   :  { %373 = vmatpush.msrb.mxu1 %v176_v50  ;;  %393 = vmatpush.msrb.mxu2 %v177_v51  ;;  %v183_v50 = vld [vmem:[#allocation8 + $0x240] sm:$0xff] }
  0x46   :  { %286 = vmatpush.msra.mxu0 %v191_v61  ;;  %334 = vmatpush.msra.mxu3 %v254_v30  ;;  %v528_v51 = vld [vmem:[#allocation13 + $0x78] sm:$0xff]  ;;  %v158_v61 = vld [vmem:[#allocation8 + $0x178] sm:$0xff]  ;;  %v225_v30 = vld [vmem:[#allocation8 + $0x390] sm:$0xff] }
  0x47   :  { %374 = vmatpush.msrb.mxu1 %v171_v53  ;;  %394 = vmatpush.msrb.mxu2 %v172_v54  ;;  %v178_v53 = vld [vmem:[#allocation8 + $0x218] sm:$0xff] }
  0x48   :  { %287 = vmatmul.f32.vlgmr.msra.gmra.mxu0 %v1092_v46  ;;  %335 = vmatpush.msra.mxu3 %v249_v31  ;;  %v526_v54 = vld [vmem:[#allocation13 + $0x68] sm:$0xff]  ;;  %v220_v31 = vld [vmem:[#allocation8 + $0x368] sm:$0xff] }
  0x49   :  { %375 = vmatpush.msrb.mxu1 %v166_v56  ;;  %395 = vmatpush.msrb.mxu2 %v167_v57  ;;  %v525_v56 = vld [vmem:[#allocation13 + $0x60] sm:$0xff] }
  0x4a   :  { %336 = vmatpush.msra.mxu3 %v244_v32  ;;  %v168_v57 = vld [vmem:[#allocation8 + $0x1c8] sm:$0xff] }
  0x4b   :  { %376 = vmatpush.msrb.mxu1 %v161_v59  ;;  %396 = vmatpush.msrb.mxu2 %v162_v60  ;;  %v163_v59 = vld [vmem:[#allocation8 + $0x1a0] sm:$0xff] }
  0x4c   :  { %337 = vmatpush.msra.mxu3 %v239_v33  ;;  %v523_v60 = vld [vmem:[#allocation13 + $0x50] sm:$0xff] }
  0x4d   :  { %377 = vmatpush.msrb.mxu1 %v156_v62  ;;  %397 = vmatpush.msrb.mxu2 %v157_v63  ;;  %v153_v62 = vld [vmem:[#allocation8 + $0x150] sm:$0xff]  ;;  %v148_v63 = vld [vmem:[#allocation8 + $0x128] sm:$0xff] }
  0x4e   :  { %338 = vmatpush.msra.mxu3 %v234_v34  ;;  %v215_v34 = vld [vmem:[#allocation8 + $0x340] sm:$0xff] }
  0x4f   :  { %378 = vmatpush.msrb.mxu1 %v151_v0  ;;  %398 = vmatpush.msrb.mxu2 %v152_v1  ;;  %v143_v0 = vld [vmem:[#allocation8 + $0x100] sm:$0xff]  ;;  %v138_v1 = vld [vmem:[#allocation8 + $0xd8] sm:$0xff] }
  0x50   :  { %339 = vmatpush.msra.mxu3 %v229_v35 }
  0x51   :  { %379 = vmatpush.msrb.mxu1 %v146_v2  ;;  %399 = vmatpush.msrb.mxu2 %v147_v3  ;;  %v133_v2 = vld [vmem:[#allocation8 + $0xb0] sm:$0xff]  ;;  %v128_v3 = vld [vmem:[#allocation8 + $0x88] sm:$0xff] }
  0x52   :  { %340 = vmatpush.msra.mxu3 %v224_v36  ;;  %v210_v36 = vld [vmem:[#allocation8 + $0x318] sm:$0xff] }
  0x53   :  { %380 = vmatpush.msrb.mxu1 %v141_v4  ;;  %400 = vmatpush.msrb.mxu2 %v142_v5  ;;  %v123_v4 = vld [vmem:[#allocation8 + $0x60] sm:$0xff]  ;;  %v118_v5 = vld [vmem:[#allocation8 + $0x38] sm:$0xff] }
  0x54   :  { %341 = vmatpush.msra.mxu3 %v219_v37 }
  0x55   :  { %381 = vmatpush.msrb.mxu1 %v136_v6  ;;  %401 = vmatpush.msrb.mxu2 %v137_v7  ;;  %v113_v6 = vld [vmem:[#allocation8 + $0x10] sm:$0xff] }
  0x56   :  { %342 = vmatpush.msra.mxu3 %v214_v40  ;;  %v522_v7 = vld [vmem:[#allocation13 + $0x48] sm:$0xff] }
  0x57   :  { %382 = vmatpush.msrb.mxu1 %v131_v8  ;;  %402 = vmatpush.msrb.mxu2 %v132_v9  ;;  %v521_v8 = vld [vmem:[#allocation13 + $0x40] sm:$0xff]  ;;  %v520_v9 = vld [vmem:[#allocation13 + $0x38] sm:$0xff] }
  0x58   :  { %343 = vmatpush.msra.mxu3 %v209_v42  ;;  %v205_v40 = vld [vmem:[#allocation8 + $0x2f0] sm:$0xff] }
  0x59   :  { %383 = vmatpush.msrb.mxu1 %v126_v10  ;;  %403 = vmatpush.msrb.mxu2 %v127_v11  ;;  %v519_v10 = vld [vmem:[#allocation13 + $0x30] sm:$0xff]  ;;  %v518_v11 = vld [vmem:[#allocation13 + $0x28] sm:$0xff] }
  0x5a   :  { %344 = vmatpush.msra.mxu3 %v204_v43  ;;  %v200_v43 = vld [vmem:[#allocation8 + $0x2c8] sm:$0xff] }
  0x5b   :  { %384 = vmatpush.msrb.mxu1 %v121_v12  ;;  %404 = vmatpush.msrb.mxu2 %v122_v13  ;;  %v517_v12 = vld [vmem:[#allocation13 + $0x20] sm:$0xff]  ;;  %v516_v13 = vld [vmem:[#allocation13 + $0x18] sm:$0xff] }
  0x5c   :  { %345 = vmatpush.msra.mxu3 %v199_v44 }
  0x5d   :  { %385 = vmatpush.msrb.mxu1 %v116_v14  ;;  %405 = vmatpush.msrb.mxu2 %v117_v15  ;;  %v515_v14 = vld [vmem:[#allocation13 + $0x10] sm:$0xff]  ;;  %v514_v15 = vld [vmem:[#allocation13 + $0x8] sm:$0xff] }
  0x5e   :  { %346 = vmatpush.msra.mxu3 %v194_v45 }
  0x5f   :  { %386 = vmatpush.msrb.mxu1 %v111_v16  ;;  %406 = vmatpush.msrb.mxu2 %v112_v17  ;;  %v513_v16 = vld [vmem:[#allocation13] sm:$0xff]  ;;  %v270_v17 = vld [vmem:[#allocation8 + $0x4f8] sm:$0xff] }
  0x60   :  { %387 = vmatmul.f32.vlgmr.msrb.gmra.mxu1 %v1097_v18  ;;  %407 = vmatmul.f32.vlgmr.msrb.gmra.mxu2 %v1097_v18 }
  0x61   :  { %411 = vmatpush.msrb.mxu3 %v188_v47  ;;  %529 = vmatpush.msra.mxu2 %v528_v51  ;;  %v195_v47 = vld [vmem:[#allocation8 + $0x2a0] sm:$0xff] }
  0x62   :  { %347 = vmatmul.f32.vlgmr.msra.gmra.mxu3 %v1092_v46  ;;  %351 = vmatpush.msrb.mxu0 %v270_v17  ;;  %v549_v17 = vld [vmem:[#allocation10] sm:$0xff] }
  0x63   :  { %412 = vmatpush.msrb.mxu3 %v183_v50  ;;  %530 = vmatpush.msra.mxu2 %v527_v52  ;;  %v189_v50 = vld [vmem:[#allocation8 + $0x270] sm:$0xff] }
  0x65   :  { %413 = vmatpush.msrb.mxu3 %v178_v53  ;;  %531 = vmatpush.msra.mxu2 %v526_v54  ;;  %v564_v53 = vld [vmem:[#allocation10 + $0x258] sm:$0xff]  ;;  %v184_v54 = vld [vmem:[#allocation8 + $0x248] sm:$0xff] }
  0x67   :  { %414 = vmatpush.msrb.mxu3 %v173_v55  ;;  %532 = vmatpush.msra.mxu2 %v525_v56  ;;  %v563_v55 = vld [vmem:[#allocation10 + $0x230] sm:$0xff]  ;;  %v562_v56 = vld [vmem:[#allocation10 + $0x208] sm:$0xff] }
  0x69   :  { %415 = vmatpush.msrb.mxu3 %v168_v57  ;;  %533 = vmatpush.msra.mxu2 %v524_v58  ;;  %v179_v57 = vld [vmem:[#allocation8 + $0x220] sm:$0xff] }
  0x6a   :  { %v561_v58 = vld [vmem:[#allocation10 + $0x1e0] sm:$0xff] }
  0x6b   :  { %416 = vmatpush.msrb.mxu3 %v163_v59  ;;  %534 = vmatpush.msra.mxu2 %v523_v60  ;;  %v174_v59 = vld [vmem:[#allocation8 + $0x1f8] sm:$0xff]  ;;  %v169_v60 = vld [vmem:[#allocation8 + $0x1d0] sm:$0xff] }
  0x6d   :  { %417 = vmatpush.msrb.mxu3 %v158_v61  ;;  %535 = vmatpush.msra.mxu2 %v522_v7  ;;  %v559_v61 = vld [vmem:[#allocation10 + $0x190] sm:$0xff]  ;;  %v139_v7 = vld [vmem:[#allocation8 + $0xe0] sm:$0xff] }
  0x6f   :  { %418 = vmatpush.msrb.mxu3 %v153_v62  ;;  %536 = vmatpush.msra.mxu2 %v521_v8  ;;  %v164_v62 = vld [vmem:[#allocation8 + $0x1a8] sm:$0xff]  ;;  %v553_v8 = vld [vmem:[#allocation10 + $0xa0] sm:$0xff] }
  0x71   :  { %419 = vmatpush.msrb.mxu3 %v148_v63  ;;  %537 = vmatpush.msra.mxu2 %v520_v9  ;;  %v558_v63 = vld [vmem:[#allocation10 + $0x168] sm:$0xff]  ;;  %v134_v9 = vld [vmem:[#allocation8 + $0xb8] sm:$0xff] }
  0x73   :  { %420 = vmatpush.msrb.mxu3 %v143_v0  ;;  %538 = vmatpush.msra.mxu2 %v519_v10  ;;  %v159_v0 = vld [vmem:[#allocation8 + $0x180] sm:$0xff]  ;;  %v552_v10 = vld [vmem:[#allocation10 + $0x78] sm:$0xff] }
  0x75   :  { %421 = vmatpush.msrb.mxu3 %v138_v1  ;;  %539 = vmatpush.msra.mxu2 %v518_v11  ;;  %v557_v1 = vld [vmem:[#allocation10 + $0x140] sm:$0xff]  ;;  %v129_v11 = vld [vmem:[#allocation8 + $0x90] sm:$0xff] }
  0x77   :  { %422 = vmatpush.msrb.mxu3 %v133_v2  ;;  %540 = vmatpush.msra.mxu2 %v517_v12  ;;  %v556_v2 = vld [vmem:[#allocation10 + $0x118] sm:$0xff]  ;;  %v551_v12 = vld [vmem:[#allocation10 + $0x50] sm:$0xff] }
  0x79   :  { %423 = vmatpush.msrb.mxu3 %v128_v3  ;;  %541 = vmatpush.msra.mxu2 %v516_v13  ;;  %v149_v3 = vld [vmem:[#allocation8 + $0x130] sm:$0xff]  ;;  %v124_v13 = vld [vmem:[#allocation8 + $0x68] sm:$0xff] }
  0x7b   :  { %424 = vmatpush.msrb.mxu3 %v123_v4  ;;  %542 = vmatpush.msra.mxu2 %v515_v14  ;;  %v555_v4 = vld [vmem:[#allocation10 + $0xf0] sm:$0xff]  ;;  %v550_v14 = vld [vmem:[#allocation10 + $0x28] sm:$0xff] }
  0x7d   :  { %425 = vmatpush.msrb.mxu3 %v118_v5  ;;  %543 = vmatpush.msra.mxu2 %v514_v15  ;;  %v144_v5 = vld [vmem:[#allocation8 + $0x108] sm:$0xff]  ;;  %v119_v15 = vld [vmem:[#allocation8 + $0x40] sm:$0xff] }
  0x7f   :  { %426 = vmatpush.msrb.mxu3 %v113_v6  ;;  %544 = vmatpush.msra.mxu2 %v513_v16  ;;  %v554_v6 = vld [vmem:[#allocation10 + $0xc8] sm:$0xff]  ;;  %v114_v16 = vld [vmem:[#allocation8 + $0x18] sm:$0xff] }
  0x80   :  { %427 = vmatmul.f32.vlgmr.msrb.gmra.mxu3 %v1097_v18 }
  0x81   :  { %565 = vmatpush.msra.mxu3 %v564_v53  ;;  %v626_v53 = vld [vmem:[#allocation10 + $0x218] sm:$0xff] }
  0x83   :  { %566 = vmatpush.msra.mxu3 %v563_v55  ;;  %v621_v55 = vld [vmem:[#allocation10 + $0x1d0] sm:$0xff] }
  0x85   :  { %567 = vmatpush.msra.mxu3 %v562_v56  ;;  %v623_v56 = vld [vmem:[#allocation10 + $0x1f0] sm:$0xff] }
  0x87   :  { %568 = vmatpush.msra.mxu3 %v561_v58  ;;  %v618_v58 = vld [vmem:[#allocation10 + $0x1a8] sm:$0xff] }
  0xbd   :  { %v1101_v19 = vpop.f32.mrf.mxu1 }
  0xc5   :  { %v288_v21 = vpop.f32.mrf.mxu0 }
  0xdd   :  { %v388_v23 = vpop.f32.mrf.mxu1 }
  0xde   :  { %v389_v24 = vadd.f32 %v388_v23, %v288_v21  ;;  %v265_v21 = vld [vmem:[#allocation8 + $0x4d0] sm:$0xff]  ;;  %v255_v23 = vld [vmem:[#allocation8 + $0x480] sm:$0xff] }
  0xdf   :  { %352 = vmatpush.msrb.mxu0 %v265_v21  ;;  %v190_v21 = vld [vmem:[#allocation8 + $0x278] sm:$0xff] }
  0xe0   :  { %v483_v25 = vadd.f32 %v473_v22, %v389_v24  ;;  %v260_v22 = vld [vmem:[#allocation8 + $0x4a8] sm:$0xff]  ;;  %v250_v24 = vld [vmem:[#allocation8 + $0x458] sm:$0xff]  ;;  %451 = vmatpush.msra.mxu1 %v190_v21  ;;  %v589_v21 = vld [vmem:[#allocation10 + $0x30] sm:$0xff] }
  0xe1   :  { %353 = vmatpush.msrb.mxu0 %v260_v22  ;;  %v185_v22 = vld [vmem:[#allocation8 + $0x250] sm:$0xff] }
  0xe2   :  { %v489_v26 = vsel %vm488_vm0, %v483_v25, -inf  ;;  %452 = vmatpush.msra.mxu1 %v185_v22  ;;  %v590_v22 = vld [vmem:[#allocation10 + $0x38] sm:$0xff] }
  0xe3   :  { %490 = vmax.xlane.f32.xlu0 %v489_v26  ;;  %354 = vmatpush.msrb.mxu0 %v255_v23  ;;  %v240_v26 = vld [vmem:[#allocation8 + $0x408] sm:$0xff] }
  0xe4   :  { %v180_v23 = vld [vmem:[#allocation8 + $0x228] sm:$0xff] }
  0xe5   :  { %355 = vmatpush.msrb.mxu0 %v250_v24  ;;  %v175_v24 = vld [vmem:[#allocation8 + $0x200] sm:$0xff]  ;;  %453 = vmatpush.msra.mxu1 %v180_v23 }
  0xe6   :  { %v591_v23 = vld [vmem:[#allocation10 + $0x40] sm:$0xff] }
  0xe7   :  { %454 = vmatpush.msra.mxu1 %v175_v24  ;;  %v586_v24 = vld [vmem:[#allocation10 + $0x8] sm:$0xff] }
 0x156   :  { %v491_v38 = vpop.xlane.xlu0 %490 }
 0x157   :  { %v492_v39 = vsub.f32 %v483_v25, %v491_v38  ;;  %v245_v25 = vld [vmem:[#allocation8 + $0x430] sm:$0xff] }
 0x158   :  { %356 = vmatpush.msrb.mxu0 %v245_v25  ;;  %v170_v25 = vld [vmem:[#allocation8 + $0x1d8] sm:$0xff] }
 0x159   :  { %v493_v41 = vmul.f32 1.442695, %v492_v39  ;;  %455 = vmatpush.msra.mxu1 %v170_v25  ;;  %v587_v25 = vld [vmem:[#allocation10 + $0x10] sm:$0xff] }
 0x15a   :  { %357 = vmatpush.msrb.mxu0 %v240_v26  ;;  %v165_v26 = vld [vmem:[#allocation8 + $0x1b0] sm:$0xff] }
 0x15b   :  { %838 = vpow2.f32 %v493_v41  ;;  %v799_v41 = vlaneseq  ;;  %456 = vmatpush.msra.mxu1 %v165_v26  ;;  %v588_v26 = vld [vmem:[#allocation10 + $0x18] sm:$0xff] }
 0x15c   :  { %358 = vmatpush.msrb.mxu0 %v235_v28  ;;  %v155_v28 = vld [vmem:[#allocation8 + $0x160] sm:$0xff] }
 0x15d   :  { %vm1113_vm5 = vcmp.lt.s32.totalorder %v799_v41, 128  ;;  %v628_v41 = vld [vmem:[#allocation10 + $0x238] sm:$0xff] }
 0x15e   :  { %359 = vmatpush.msrb.mxu0 %v230_v29  ;;  %v1122_v29 = vpop.f32.mrf.mxu2 }
 0x160   :  { %360 = vmatpush.msrb.mxu0 %v225_v30  ;;  %v150_v30 = vld [vmem:[#allocation8 + $0x138] sm:$0xff] }
 0x161   :  { %v1107_v48 = vpop.eup %838 }
 0x162   :  { %v495_v49 = vsel %vm488_vm0, %v1107_v48, 0.0  ;;  %361 = vmatpush.msrb.mxu0 %v220_v31  ;;  %v145_v31 = vld [vmem:[#allocation8 + $0x110] sm:$0xff] }
 0x163   :  { %496 = vadd.xlane.f32.xlu0 %v495_v49 }
 0x164   :  { %362 = vmatpush.msrb.mxu0 %v215_v34  ;;  %v130_v34 = vld [vmem:[#allocation8 + $0x98] sm:$0xff] }
 0x166   :  { %363 = vmatpush.msrb.mxu0 %v210_v36  ;;  %v125_v36 = vld [vmem:[#allocation8 + $0x70] sm:$0xff] }
 0x168   :  { %364 = vmatpush.msrb.mxu0 %v205_v40  ;;  %v633_v40 = vld [vmem:[#allocation10 + $0x270] sm:$0xff] }
 0x169   :  { %682 = vmatpush.msrb.mxu2 %v633_v40  ;;  %v762_v40 = vld [vmem:[#allocation10 + $0x200] sm:$0xff] }
 0x16a   :  { %365 = vmatpush.msrb.mxu0 %v200_v43  ;;  %v632_v43 = vld [vmem:[#allocation10 + $0x268] sm:$0xff] }
 0x16c   :  { %366 = vmatpush.msrb.mxu0 %v195_v47  ;;  %v627_v47 = vld [vmem:[#allocation10 + $0x220] sm:$0xff] }
 0x16d   :  { %367 = vmatmul.f32.vlgmr.msrb.gmra.mxu0 %v1092_v46  ;;  %v154_v46 = vld [vmem:[#allocation8 + $0x158] sm:$0xff] }
 0x16e   :  { %431 = vmatpush.msra.mxu0 %v189_v50  ;;  %v622_v50 = vld [vmem:[#allocation10 + $0x1e8] sm:$0xff] }
 0x170   :  { %432 = vmatpush.msra.mxu0 %v184_v54  ;;  %v619_v54 = vld [vmem:[#allocation10 + $0x1c0] sm:$0xff] }
 0x172   :  { %433 = vmatpush.msra.mxu0 %v179_v57  ;;  %v616_v57 = vld [vmem:[#allocation10 + $0x198] sm:$0xff] }
 0x174   :  { %434 = vmatpush.msra.mxu0 %v174_v59  ;;  %v620_v59 = vld [vmem:[#allocation10 + $0x1c8] sm:$0xff] }
 0x176   :  { %435 = vmatpush.msra.mxu0 %v169_v60  ;;  %v617_v60 = vld [vmem:[#allocation10 + $0x1a0] sm:$0xff] }
 0x178   :  { %436 = vmatpush.msra.mxu0 %v164_v62  ;;  %v612_v62 = vld [vmem:[#allocation10 + $0x158] sm:$0xff] }
 0x17a   :  { %437 = vmatpush.msra.mxu0 %v159_v0  ;;  %v607_v0 = vld [vmem:[#allocation10 + $0x120] sm:$0xff] }
 0x17c   :  { %438 = vmatpush.msra.mxu0 %v154_v46  ;;  %v611_v46 = vld [vmem:[#allocation10 + $0x150] sm:$0xff] }
 0x17e   :  { %439 = vmatpush.msra.mxu0 %v149_v3  ;;  %v606_v3 = vld [vmem:[#allocation10 + $0x108] sm:$0xff] }
 0x180   :  { %440 = vmatpush.msra.mxu0 %v144_v5  ;;  %v601_v5 = vld [vmem:[#allocation10 + $0xd0] sm:$0xff] }
 0x182   :  { %441 = vmatpush.msra.mxu0 %v139_v7  ;;  %v605_v7 = vld [vmem:[#allocation10 + $0x100] sm:$0xff] }
 0x184   :  { %442 = vmatpush.msra.mxu0 %v134_v9  ;;  %v600_v9 = vld [vmem:[#allocation10 + $0xb8] sm:$0xff] }
 0x186   :  { %443 = vmatpush.msra.mxu0 %v129_v11  ;;  %v595_v11 = vld [vmem:[#allocation10 + $0x80] sm:$0xff] }
 0x188   :  { %444 = vmatpush.msra.mxu0 %v124_v13  ;;  %v599_v13 = vld [vmem:[#allocation10 + $0xb0] sm:$0xff] }
 0x18a   :  { %445 = vmatpush.msra.mxu0 %v119_v15  ;;  %v594_v15 = vld [vmem:[#allocation10 + $0x68] sm:$0xff] }
 0x18c   :  { %446 = vmatpush.msra.mxu0 %v114_v16  ;;  %v596_v16 = vld [vmem:[#allocation10 + $0x88] sm:$0xff] }
 0x18d   :  { %447 = vmatmul.f32.vlgmr.msra.gmra.mxu0 %v1097_v18 }
 0x1d6   :  { %v497_v27 = vpop.xlane.xlu0 %496 }
 0x1d7   :  { %840 = vrcp.f32 %v497_v27  ;;  %v509_v37 = vand.u32 2147483648, %v497_v27  ;;  %v507_v39 = vand.u32 2147483647, %v497_v27  ;;  %vm503_vm2 = vweird.f32 %v497_v27 }
 0x1d9   :  { %v510_v44 = vor.u32 1.1754944e-38, %v509_v37  ;;  %vm508_vm4 = vcmp.eq.f32.partialorder %v507_v39, 8.507059e+37  ;;  %v120_v37 = vld [vmem:[#allocation8 + $0x48] sm:$0xff]  ;;  %v115_v39 = vld [vmem:[#allocation8 + $0x20] sm:$0xff] }
 0x1dd   :  { %v841_v32 = vpop.eup %840 }
 0x1de   :  { %v499_v33 = vmul.f32 %v841_v32, %v497_v27  ;;  %vm504_vm1 = vweird.f32 %v841_v32  ;;  %v160_v27 = vld [vmem:[#allocation8 + $0x188] sm:$0xff] }
 0x1df   :  { %vm505_vm3 = vmor %vm503_vm2, %vm504_vm1  ;;  %457 = vmatpush.msra.mxu1 %v160_v27  ;;  %v348_v27 = vpop.f32.mrf.mxu3 }
 0x1e0   :  { %v500_v35 = vsub.f32 1.0, %v499_v33  ;;  %v135_v33 = vld [vmem:[#allocation8 + $0xc0] sm:$0xff] }
 0x1e1   :  { %458 = vmatpush.msra.mxu1 %v155_v28 }
 0x1e2   :  { %v501_v38 = vmul.f32 %v841_v32, %v500_v35  ;;  %v1124_v35 = vpop.f32.mrf.mxu2 }
 0x1e3   :  { %459 = vmatpush.msra.mxu1 %v150_v30  ;;  %v409_v30 = vadd.f32 %v1124_v35, %v1101_v19  ;;  %v761_v19 = vld [vmem:[#allocation10 + $0x1d8] sm:$0xff]  ;;  %v1132_v35 = vld [vmem:[#allocation11 + $0x5] sm:$0x7] }
 0x1e4   :  { %v502_v42 = vadd.f32 %v841_v32, %v501_v38  ;;  %v631_v38 = vld [vmem:[#allocation10 + $0x260] sm:$0xff] }
 0x1e5   :  { %460 = vmatpush.msra.mxu1 %v145_v31  ;;  %642 = vmatpush.msrb.mxu0 %v631_v38  ;;  %v474_v31 = vperm.slane %v1103_v20, 1  ;;  %v764_v38 = vld [vmem:[#allocation10 + $0x250] sm:$0xff] }
 0x1e6   :  { %v506_v45 = vsel %vm505_vm3, %v841_v32, %v502_v42  ;;  %v140_v32 = vld [vmem:[#allocation8 + $0xe8] sm:$0xff] }
 0x1e7   :  { %v511_v49 = vsel %vm508_vm4, %v510_v44, %v506_v45  ;;  %461 = vmatpush.msra.mxu1 %v140_v32  ;;  %v630_v42 = vld [vmem:[#allocation10 + $0x248] sm:$0xff]  ;;  %643 = vmatpush.msrb.mxu0 %v628_v41  ;;  %v625_v44 = vld [vmem:[#allocation10 + $0x210] sm:$0xff]  ;;  %v428_v28 = vpop.f32.mrf.mxu3  ;;  %v484_v32 = vadd.f32 %v474_v31, %v409_v30 }
 0x1e8   :  { %v512_v52 = vmul.f32 %v1107_v48, %v511_v49  ;;  %v560_v48 = vld [vmem:[#allocation10 + $0x1b8] sm:$0xff]  ;;  %683 = vmatpush.msrb.mxu2 %v630_v42  ;;  %v629_v49 = vld [vmem:[#allocation10 + $0x240] sm:$0xff] }
 0x1e9   :  { %569 = vmatpush.msra.mxu3 %v560_v48  ;;  %462 = vmatpush.msra.mxu1 %v135_v33  ;;  %v615_v48 = vld [vmem:[#allocation10 + $0x180] sm:$0xff] }
 0x1ea   :  { %545 = vmatmul.f32.vlgmr.msra.gmra.mxu2 %v512_v52  ;;  %805 = vst.msk [vmem:[#allocation14 + $0x2] sm:$0x1] %vm1113_vm5, %v512_v52  ;;  %644 = vmatpush.msrb.mxu0 %v625_v44  ;;  %v624_v52 = vld [vmem:[#allocation10 + $0x1f8] sm:$0xff]  ;;  %v429_v44 = vadd.f32 %v428_v28, %v1122_v29 }
 0x1eb   :  { %570 = vmatpush.msra.mxu3 %v559_v61  ;;  %463 = vmatpush.msra.mxu1 %v130_v34  ;;  %v610_v61 = vld [vmem:[#allocation10 + $0x148] sm:$0xff] }
 0x1ec   :  { %684 = vmatpush.msrb.mxu2 %v627_v47  ;;  %645 = vmatpush.msrb.mxu0 %v622_v50  ;;  %v636_v50 = vperm.slane %v1132_v35, 0 }
 0x1ed   :  { %571 = vmatpush.msra.mxu3 %v558_v63  ;;  %464 = vmatpush.msra.mxu1 %v125_v36  ;;  %v614_v63 = vld [vmem:[#allocation10 + $0x178] sm:$0xff]  ;;  %v1130_v36 = vpop.f32.mrf.mxu0 }
 0x1ee   :  { %685 = vmatpush.msrb.mxu2 %v624_v52  ;;  %646 = vmatpush.msrb.mxu0 %v619_v54  ;;  %v637_v52 = vperm.slane %v1132_v35, 1  ;;  %v758_v54 = vld [vmem:[#allocation10 + $0x160] sm:$0xff] }
 0x1ef   :  { %572 = vmatpush.msra.mxu3 %v557_v1  ;;  %465 = vmatpush.msra.mxu1 %v120_v37  ;;  %v609_v1 = vld [vmem:[#allocation10 + $0x130] sm:$0xff]  ;;  %v765_v37 = vld [vmem:[#allocation10 + $0x278] sm:$0xff] }
 0x1f0   :  { %686 = vmatpush.msrb.mxu2 %v621_v55  ;;  %647 = vmatpush.msrb.mxu0 %v616_v57 }
 0x1f1   :  { %573 = vmatpush.msra.mxu3 %v556_v2  ;;  %466 = vmatpush.msra.mxu1 %v115_v39  ;;  %v604_v2 = vld [vmem:[#allocation10 + $0xf8] sm:$0xff]  ;;  %v763_v39 = vld [vmem:[#allocation10 + $0x228] sm:$0xff] }
 0x1f2   :  { %467 = vmatmul.f32.vlgmr.msra.gmra.mxu1 %v1097_v18  ;;  %v613_v18 = vld [vmem:[#allocation10 + $0x170] sm:$0xff]  ;;  %687 = vmatpush.msrb.mxu2 %v618_v58 }
 0x1f3   :  { %574 = vmatpush.msra.mxu3 %v555_v4  ;;  %662 = vmatpush.msrb.mxu1 %v632_v43  ;;  %v608_v4 = vld [vmem:[#allocation10 + $0x128] sm:$0xff]  ;;  %v760_v43 = vld [vmem:[#allocation10 + $0x1b0] sm:$0xff] }
 0x1f4   :  { %648 = vmatpush.msrb.mxu0 %v613_v18  ;;  %688 = vmatpush.msrb.mxu2 %v615_v48  ;;  %v757_v18 = vld [vmem:[#allocation10 + $0x138] sm:$0xff] }
 0x1f5   :  { %575 = vmatpush.msra.mxu3 %v554_v6  ;;  %663 = vmatpush.msrb.mxu1 %v629_v49  ;;  %v603_v6 = vld [vmem:[#allocation10 + $0xe0] sm:$0xff]  ;;  %v476_v49 = vperm.slane %v1103_v20, 3 }
 0x1f6   :  { %649 = vmatpush.msrb.mxu0 %v610_v61  ;;  %689 = vmatpush.msrb.mxu2 %v612_v62  ;;  %v756_v61 = vld [vmem:[#allocation10 + $0x110] sm:$0xff] }
 0x1f7   :  { %576 = vmatpush.msra.mxu3 %v553_v8  ;;  %664 = vmatpush.msrb.mxu1 %v626_v53  ;;  %v598_v8 = vld [vmem:[#allocation10 + $0xa8] sm:$0xff] }
 0x1f8   :  { %650 = vmatpush.msrb.mxu0 %v607_v0  ;;  %690 = vmatpush.msrb.mxu2 %v609_v1  ;;  %v759_v53 = vld [vmem:[#allocation10 + $0x188] sm:$0xff]  ;;  %v754_v1 = vld [vmem:[#allocation10 + $0xc0] sm:$0xff] }
 0x1f9   :  { %577 = vmatpush.msra.mxu3 %v552_v10  ;;  %665 = vmatpush.msrb.mxu1 %v623_v56  ;;  %v602_v10 = vld [vmem:[#allocation10 + $0xd8] sm:$0xff]  ;;  %v755_v0 = vld [vmem:[#allocation10 + $0xe8] sm:$0xff] }
 0x1fa   :  { %651 = vmatpush.msrb.mxu0 %v604_v2  ;;  %691 = vmatpush.msrb.mxu2 %v606_v3  ;;  %v752_v2 = vld [vmem:[#allocation10 + $0x70] sm:$0xff]  ;;  %v751_v3 = vld [vmem:[#allocation10 + $0x48] sm:$0xff] }
 0x1fb   :  { %578 = vmatpush.msra.mxu3 %v551_v12  ;;  %666 = vmatpush.msrb.mxu1 %v620_v59  ;;  %v597_v12 = vld [vmem:[#allocation10 + $0x90] sm:$0xff] }
 0x1fc   :  { %652 = vmatpush.msrb.mxu0 %v601_v5  ;;  %692 = vmatpush.msrb.mxu2 %v603_v6  ;;  %v750_v5 = vld [vmem:[#allocation10 + $0x20] sm:$0xff] }
 0x1fd   :  { %579 = vmatpush.msra.mxu3 %v550_v14  ;;  %667 = vmatpush.msrb.mxu1 %v617_v60  ;;  %v592_v14 = vld [vmem:[#allocation10 + $0x58] sm:$0xff] }
 0x1fe   :  { %653 = vmatpush.msrb.mxu0 %v598_v8  ;;  %693 = vmatpush.msrb.mxu2 %v600_v9 }
 0x1ff   :  { %580 = vmatpush.msra.mxu3 %v549_v17  ;;  %668 = vmatpush.msrb.mxu1 %v614_v63  ;;  %v593_v17 = vld [vmem:[#allocation10 + $0x60] sm:$0xff] }
 0x200   :  { %654 = vmatpush.msrb.mxu0 %v595_v11  ;;  %694 = vmatpush.msrb.mxu2 %v597_v12 }
 0x201   :  { %669 = vmatpush.msrb.mxu1 %v611_v46  ;;  %767 = vmatpush.msrb.mxu3 %v765_v37  ;;  %v753_v46 = vld [vmem:[#allocation10 + $0x98] sm:$0xff] }
 0x202   :  { %655 = vmatpush.msrb.mxu0 %v592_v14  ;;  %695 = vmatpush.msrb.mxu2 %v594_v15  ;;  %v477_v14 = vperm.slane %v1103_v20, 4 }
 0x203   :  { %670 = vmatpush.msrb.mxu1 %v608_v4  ;;  %768 = vmatpush.msrb.mxu3 %v764_v38 }
 0x204   :  { %656 = vmatpush.msrb.mxu0 %v589_v21  ;;  %696 = vmatpush.msrb.mxu2 %v591_v23 }
 0x205   :  { %671 = vmatpush.msrb.mxu1 %v605_v7  ;;  %769 = vmatpush.msrb.mxu3 %v763_v39 }
 0x206   :  { %657 = vmatpush.msrb.mxu0 %v586_v24  ;;  %697 = vmatpush.msrb.mxu2 %v588_v26  ;;  %v638_v24 = vperm.slane %v1132_v35, 2  ;;  %v856_v35 = vld [vmem:[#allocation2] sm:$0x1] }
 0x207   :  { %672 = vmatpush.msrb.mxu1 %v602_v10  ;;  %770 = vmatpush.msrb.mxu3 %v762_v40 }
 0x209   :  { %673 = vmatpush.msrb.mxu1 %v599_v13  ;;  %771 = vmatpush.msrb.mxu3 %v761_v19 }
 0x20a   :  { %v448_v41 = vpop.f32.mrf.mxu0 }
 0x20b   :  { %674 = vmatpush.msrb.mxu1 %v596_v16  ;;  %772 = vmatpush.msrb.mxu3 %v760_v43  ;;  %v449_v47 = vadd.f32 %v448_v41, %v348_v27 }
 0x20d   :  { %675 = vmatpush.msrb.mxu1 %v593_v17  ;;  %773 = vmatpush.msrb.mxu3 %v759_v53  ;;  %v486_v58 = vadd.f32 %v476_v49, %v449_v47 }
 0x20f   :  { %676 = vmatpush.msrb.mxu1 %v590_v22  ;;  %774 = vmatpush.msrb.mxu3 %v758_v54 }
 0x211   :  { %677 = vmatpush.msrb.mxu1 %v587_v25  ;;  %775 = vmatpush.msrb.mxu3 %v757_v18 }
 0x213   :  { %776 = vmatpush.msrb.mxu3 %v756_v61 }
 0x215   :  { %777 = vmatpush.msrb.mxu3 %v755_v0 }
 0x217   :  { %778 = vmatpush.msrb.mxu3 %v754_v1 }
 0x219   :  { %779 = vmatpush.msrb.mxu3 %v753_v46 }
 0x21b   :  { %780 = vmatpush.msrb.mxu3 %v752_v2 }
 0x21d   :  { %781 = vmatpush.msrb.mxu3 %v751_v3 }
 0x21f   :  { %782 = vmatpush.msrb.mxu3 %v750_v5 }
 0x26d   :  { %v546_v45 = vpop.f32.mrf.mxu2 }
 0x26e   :  { %581 = vmatmul.f32.vlgmr.msra.gmra.mxu3 %v546_v45  ;;  %v475_v45 = vperm.slane %v1103_v20, 2 }
 0x26f   :  { %v468_v42 = vpop.f32.mrf.mxu1 }
 0x270   :  { %v485_v57 = vadd.f32 %v475_v45, %v429_v44  ;;  %v469_v17 = vadd.f32 %v468_v42, %v1130_v36  ;;  %v766_v45 = vld [vmem:[#allocation11 + $0x8] sm:$0x1] }
 0x272   :  { %v487_v28 = vadd.f32 %v477_v14, %v469_v17 }
 0x2f1   :  { %v582_v33 = vpop.f32.mrf.mxu3 }
 0x2f2   :  { %v585_v34 = vadd.f32 %v582_v33, %v484_v32 }
 0x2f4   :  { %658 = vmatmul.f32.vlgmr.msrb.gmra.mxu0 %v585_v34  ;;  %678 = vmatmul.f32.vlgmr.msrb.gmra.mxu1 %v585_v34 }
 0x2f5   :  { %698 = vmatmul.f32.vlgmr.msrb.gmra.mxu2 %v585_v34 }
 0x371   :  { %v659_v55 = vpop.f32.mrf.mxu0  ;;  %v679_v56 = vpop.f32.mrf.mxu1 }
 0x372   :  { %v660_v59 = vadd.f32 %v659_v55, %v636_v50  ;;  %v680_v29 = vadd.f32 %v679_v56, %v637_v52 }
 0x374   :  { %v702_v48 = vadd.f32 %v660_v59, %v485_v57  ;;  %v722_v60 = vadd.f32 %v680_v29, %v486_v58 }
 0x376   :  { %v826_v62 = vmul.f32 -1.442695, %v702_v48  ;;  %v827_v63 = vmul.f32 -1.442695, %v722_v60 }
 0x378   :  { %842 = vpow2.f32 %v826_v62  ;;  %v699_v26 = vpop.f32.mrf.mxu2 }
 0x379   :  { %844 = vpow2.f32 %v827_v63  ;;  %v700_v32 = vadd.f32 %v699_v26, %v638_v24 }
 0x37e   :  { %v843_v4 = vpop.eup %842 }
 0x37f   :  { %v845_v6 = vpop.eup %844  ;;  %v706_v7 = vadd.f32 1.0, %v843_v4 }
 0x380   :  { %v726_v8 = vadd.f32 1.0, %v845_v6 }
 0x381   :  { %846 = vrcp.f32 %v706_v7  ;;  %v718_v16 = vand.u32 2147483648, %v706_v7  ;;  %v716_v22 = vand.u32 2147483647, %v706_v7  ;;  %vm712_vm7 = vweird.f32 %v706_v7 }
 0x382   :  { %848 = vrcp.f32 %v726_v8  ;;  %v738_v34 = vand.u32 2147483648, %v726_v8  ;;  %vm732_vm11 = vweird.f32 %v726_v8  ;;  %v736_v36 = vand.u32 2147483647, %v726_v8 }
 0x383   :  { %v719_v27 = vor.u32 1.1754944e-38, %v718_v16  ;;  %vm717_vm9 = vcmp.eq.f32.partialorder %v716_v22, 8.507059e+37 }
 0x384   :  { %v739_v39 = vor.u32 1.1754944e-38, %v738_v34  ;;  %vm737_vm13 = vcmp.eq.f32.partialorder %v736_v36, 8.507059e+37 }
 0x387   :  { %v847_v9 = vpop.eup %846 }
 0x388   :  { %v849_v10 = vpop.eup %848  ;;  %v708_v11 = vmul.f32 %v847_v9, %v706_v7  ;;  %vm713_vm6 = vweird.f32 %v847_v9 }
 0x389   :  { %v728_v12 = vmul.f32 %v849_v10, %v726_v8  ;;  %vm714_vm8 = vmor %vm712_vm7, %vm713_vm6  ;;  %vm733_vm10 = vweird.f32 %v849_v10 }
 0x38a   :  { %v709_v13 = vsub.f32 1.0, %v708_v11  ;;  %vm734_vm12 = vmor %vm732_vm11, %vm733_vm10 }
 0x38b   :  { %v729_v15 = vsub.f32 1.0, %v728_v12 }
 0x38c   :  { %v710_v21 = vmul.f32 %v847_v9, %v709_v13 }
 0x38d   :  { %v730_v23 = vmul.f32 %v849_v10, %v729_v15 }
 0x38e   :  { %v711_v25 = vadd.f32 %v847_v9, %v710_v21 }
 0x38f   :  { %v731_v20 = vadd.f32 %v849_v10, %v730_v23 }
 0x390   :  { %v715_v30 = vsel %vm714_vm8, %v847_v9, %v711_v25 }
 0x391   :  { %v720_v31 = vsel %vm717_vm9, %v719_v27, %v715_v30  ;;  %v735_v38 = vsel %vm734_vm12, %v849_v10, %v731_v20 }
 0x392   :  { %v742_v33 = vmul.f32 %v720_v31, %v487_v28  ;;  %v740_v40 = vsel %vm737_vm13, %v739_v39, %v735_v38 }
 0x393   :  { %v745_v41 = vsub.f32 1.0, %v740_v40  ;;  %v747_v43 = vmul.f32 %v856_v35, %v740_v40 }
 0x394   :  { %v743_v37 = vadd.f32 %v742_v33, %v700_v32 }
 0x396   :  { %850 = vtanh.f32 %v743_v37 }
 0x39c   :  { %v851_v42 = vpop.eup %850 }
 0x39d   :  { %v746_v19 = vmul.f32 %v851_v42, %v745_v41 }
 0x39f   :  { %v748_v44 = vadd.f32 %v747_v43, %v746_v19 }
 0x3a1   :  { %749 = vst [vmem:[#allocation2] sm:$0x1] %v748_v44  ;;  %783 = vmatmul.f32.vlgmr.msrb.gmra.mxu3 %v748_v44 }
 0x3a2   :  { %804 = vst.msk [vmem:[#allocation14 + $0x1] sm:$0x1] %vm1113_vm5, %v748_v44 }
 0x424   :  { %v784_v47 = vpop.f32.mrf.mxu3 }
 0x425   :  { %v785_v49 = vadd.f32 %v784_v47, %v766_v45 }
 0x427   :  { %v787_v50 = vsel %vm488_vm0, %v785_v49, -inf }
 0x428   :  { %788 = vmax.xlane.f32.xlu1 %v787_v50 }
 0x49b   :  { %v789_v52 = vpop.xlane.xlu1 %788 }
 0x49c   :  { %v790_v53 = vsub.f32 %v785_v49, %v789_v52 }
 0x49e   :  { %v791_v54 = vmul.f32 1.442695, %v790_v53 }
 0x4a0   :  { %852 = vpow2.f32 %v791_v54 }
 0x4a6   :  { %v853_v55 = vpop.eup %852 }
 0x4a7   :  { %v793_v56 = vsel %vm488_vm0, %v853_v55, 0.0 }
 0x4a8   :  { %794 = vadd.xlane.f32.xlu1 %v793_v56 }
 0x51b   :  { %v795_v57 = vpop.xlane.xlu1 %794 }
 0x51c   :  { %854 = vlog2.f32 %v795_v57 }
 0x522   :  { %v855_v58 = vpop.eup %854 }
 0x523   :  { %v797_v59 = vmul.f32 0.6931472, %v855_v58 }
 0x525   :  { %v798_v29 = vsub.f32 %v790_v53, %v797_v59 }
 0x527   :  { %803 = vst.msk [vmem:[#allocation14] sm:$0x1] %vm1113_vm5, %v798_v29 }
 0x528   :  { %816 = dma.vmem_to_hbm [thread:$0]  %s812_s10, 48, %s814_s15, [#allocation7]  }
 0x529   :  { %1007 = dma.done.wait [#allocation7], 48  }
 0x52a   :  { %1008 = vsyncadd [#allocation7], 4294967248 }
 0x52b   :  { %821 = vsyncpa [#allocation6], 1 }
 0x52c   :  { %822 = vsyncpa [#allocation9], 1 }
 0x52d   :  { %823 = vsyncpa [#allocation12], 1 }
 0x52e   :  { %824 = vsyncpa [#allocation7], 1 }

</bundles_post_ra>
